<compile_context>
chip_gen: v6e
topology: v6e:2x2x1
jax: 0.10.0
libtpu: 0.0.40
codegen_flags: <defaults>
</compile_context>

<pallas_src>
import functools

import numpy as np
import jax
import jax.numpy as jnp
from jax.experimental import pallas as pl
from jax.experimental.pallas import tpu as pltpu

BOOST_ACCEL = 0.18
DRAG_CON = 0.05
FRAME_TIME = 0.1
GRAVITY_ACCEL = 0.12

_PACK = 32                 # states per packed 128-lane row (4 f32 components each)
_MAX_BLOCK_ROWS = 8192     # packed rows per grid step = 262144 states (~10 MiB/step)
_PALLAS_MIN_N = 32768      # below this batch size the fused jnp path wins


def _build_affine_mats():
    """Constants of the packed-row affine map:  out = s + s @ D + a @ K + b."""
    dt = FRAME_TIME
    boost = BOOST_ACCEL * FRAME_TIME
    g = -(DRAG_CON + GRAVITY_ACCEL) * FRAME_TIME
    d = np.zeros((128, 128), np.float32)   # position <- dt * (new) velocity
    k = np.zeros((64, 128), np.float32)    # thrust routing (already through step_mat)
    b = np.zeros((1, 128), np.float32)     # gravity + drag bias (through step_mat)
    for s in range(_PACK):
        d[4 * s + 2, 4 * s + 0] = dt
        d[4 * s + 3, 4 * s + 1] = dt
        k[2 * s + 0, 4 * s + 0] = boost * dt
        k[2 * s + 0, 4 * s + 2] = boost
        k[2 * s + 1, 4 * s + 1] = boost * dt
        k[2 * s + 1, 4 * s + 3] = boost
        b[0, 4 * s + 1] = g * dt
        b[0, 4 * s + 3] = g
    return d, k, b


_D_NP, _K_NP, _B_NP = _build_affine_mats()


def _dynamics_kernel(state_ref, action_ref, d_ref, k_ref, b_ref, out_ref):
    # state_ref  : (bs, 128) packed rows, lane = 4*s_local + component
    # action_ref : (bs, 64)  packed rows, lane = 2*s_local + component
    # d_ref/k_ref/b_ref : small constant routing matrices / bias (same block
    #                     index every step -> fetched once, kept in VMEM)
    s = state_ref[...]
    out = s + jnp.dot(s, d_ref[...], preferred_element_type=jnp.float32)
    out = out + jnp.dot(action_ref[...], k_ref[...],
                        preferred_element_type=jnp.float32)
    out_ref[...] = out + b_ref[...]


def _dynamics_jnp(state, action):
    """Fused elementwise path; best for small batches."""
    boost = BOOST_ACCEL * FRAME_TIME
    g = -(DRAG_CON + GRAVITY_ACCEL) * FRAME_TIME
    vx = state[:, 2] + boost * action[:, 0]
    vy = state[:, 3] + boost * action[:, 1] + g
    x = state[:, 0] + FRAME_TIME * vx
    y = state[:, 1] + FRAME_TIME * vy
    return jnp.stack([x, y, vx, vy], axis=1)


def _dynamics_pallas(state, action, block_rows):
    n = state.shape[0]
    pad = (-n) % _PACK
    if pad:  # pad batch up to a multiple of 32 states (one extra copy; rare case)
        state = jnp.pad(state, ((0, pad), (0, 0)))
        action = jnp.pad(action, ((0, pad), (0, 0)))
    n_pad = n + pad
    rows = n_pad // _PACK

    # Free row-major reshapes into lane-dense slabs (no HBM relayout).
    s2 = state.reshape(rows, 4 * _PACK)     # (rows, 128)
    a2 = action.reshape(rows, 2 * _PACK)    # (rows, 64)

    if block_rows is None:
        block_rows = _MAX_BLOCK_ROWS
    if rows <= block_rows:
        block_rows = rows                              # single full block
    else:
        block_rows = max(8, (block_rows // 8) * 8)     # keep (8,128) alignment
    grid = (pl.cdiv(rows, block_rows),)

    out2 = pl.pallas_call(
        _dynamics_kernel,
        out_shape=jax.ShapeDtypeStruct((rows, 128), jnp.float32),
        grid=grid,
        in_specs=[
            pl.BlockSpec((block_rows, 128), lambda i: (i, 0)),   # state slab
            pl.BlockSpec((block_rows, 64), lambda i: (i, 0)),    # action slab
            pl.BlockSpec((128, 128), lambda i: (0, 0)),          # D (constant)
            pl.BlockSpec((64, 128), lambda i: (0, 0)),           # K (constant)
            pl.BlockSpec((1, 128), lambda i: (0, 0)),            # bias (constant)
        ],
        out_specs=pl.BlockSpec((block_rows, 128), lambda i: (i, 0)),
        compiler_params=pltpu.CompilerParams(
            dimension_semantics=("parallel",),        # shard 1-D grid on v7x's 2 TCs
            vmem_limit_bytes=32 * 1024 * 1024,
        ),
    )(s2, a2, jnp.asarray(_D_NP), jnp.asarray(_K_NP), jnp.asarray(_B_NP))

    # Free reshape back to the module's [N, 4] layout.
    return out2.reshape(n_pad, 4)[:n]


@functools.partial(jax.jit, static_argnames=("block_rows", "use_pallas"))
def dynamics_forward(state, action, *, block_rows=None, use_pallas=None):
    """Pallas equivalent of Dynamics.forward(state, action).

    state:  [N, 4] float32   (x, y, x_dot, y_dot)
    action: [N, 2] float32   (thrust x, thrust y)
    returns [N, 4] float32
    """
    n = state.shape[0]
    assert state.shape == (n, 4)
    assert action.shape == (n, 2)
    state = state.astype(jnp.float32)
    action = action.astype(jnp.float32)

    if use_pallas is None:
        use_pallas = n >= _PALLAS_MIN_N   # small batches: fused XLA path is faster
    if not use_pallas:
        return _dynamics_jnp(state, action)
    # TODO(synk): for multi-step rollouts, keep state resident in a VMEM scratch
    # across timesteps (stream only the per-step actions) instead of
    # round-tripping 40 B/row through HBM every step.
    return _dynamics_pallas(state, action, block_rows)


def _reference_forward(state, action):
    """Pure-JAX reference mirroring the PyTorch code."""
    n = state.shape[0]
    act4 = jnp.concatenate([jnp.zeros((n, 2), jnp.float32), action], axis=1)
    dstate = (
        BOOST_ACCEL * FRAME_TIME * jnp.array([0.0, 0.0, 1.0, 1.0], jnp.float32) * act4
        + jnp.array([0.0, 0.0, 0.0, -DRAG_CON * FRAME_TIME], jnp.float32)
        + jnp.array([0.0, 0.0, 0.0, -GRAVITY_ACCEL * FRAME_TIME], jnp.float32)
    )
    s = state + dstate
    step_mat = jnp.array(
        [
            [1.0, 0.0, 0.0, 0.0],
            [0.0, 1.0, 0.0, 0.0],
            [FRAME_TIME, 0.0, 1.0, 0.0],
            [0.0, FRAME_TIME, 0.0, 1.0],
        ],
        dtype=jnp.float32,
    )
    return s @ step_mat


if __name__ == "__main__":
    key = jax.random.PRNGKey(0)
    k_state, k_action = jax.random.split(key)

    N = 256  # small batch of states
    state = jax.random.normal(k_state, (N, 4), dtype=jnp.float32)
    action = jax.random.normal(k_action, (N, 2), dtype=jnp.float32)

    # Force the Pallas path (the auto heuristic would take the jnp fast path
    # at this small N).
    out = dynamics_forward(state, action, use_pallas=True)
    out = jax.block_until_ready(out)

    ref = _reference_forward(state, action)
    assert out.shape == (N, 4)
    # Tolerance leaves headroom for the MXU's f32 pass decomposition across TPU
    # generations; any structural error in the routing matrices would be >= 1e-2.
    assert jnp.allclose(out, ref, atol=2e-3, rtol=2e-3)

    print("KERNEL_OK")
</pallas_src>

<mosaic_0001>
module attributes {stable_mosaic.version = 11 : i64} {
  func.func @_dynamics_kernel(%arg0: i32, %arg1: memref<8x128xf32, #tpu.memory_space<vmem>>, %arg2: memref<8x64xf32, #tpu.memory_space<vmem>>, %arg3: memref<128x128xf32, #tpu.memory_space<vmem>>, %arg4: memref<64x128xf32, #tpu.memory_space<vmem>>, %arg5: memref<1x128xf32, #tpu.memory_space<vmem>>, %arg6: memref<8x128xf32, #tpu.memory_space<vmem>>) attributes {dimension_semantics = [#tpu.dimension_semantics<parallel>], iteration_bounds = array<i64: 1>, scalar_prefetch = 0 : i64, scratch_operands = 0 : i64, tpu.core_type = #tpu.core_type<tc>, window_params = [{transform_indices = @transform_0, window_bounds = array<i64: 8, 128>}, {transform_indices = @transform_1, window_bounds = array<i64: 8, 64>}, {pipeline_mode = #tpu.pipeline_mode<synchronous>, transform_indices = @transform_2, window_bounds = array<i64: 128, 128>}, {pipeline_mode = #tpu.pipeline_mode<synchronous>, transform_indices = @transform_3, window_bounds = array<i64: 64, 128>}, {pipeline_mode = #tpu.pipeline_mode<synchronous>, transform_indices = @transform_4, window_bounds = array<i64: 1, 128>}, {transform_indices = @transform_5, window_bounds = array<i64: 8, 128>}]} {
    %c0 = arith.constant 0 : index
    %c0_0 = arith.constant 0 : index
    %0 = vector.load %arg1[%c0, %c0_0] : memref<8x128xf32, #tpu.memory_space<vmem>>, vector<8x128xf32>
    %c0_1 = arith.constant 0 : index
    %c0_2 = arith.constant 0 : index
    %1 = vector.load %arg3[%c0_1, %c0_2] : memref<128x128xf32, #tpu.memory_space<vmem>>, vector<128x128xf32>
    %cst = arith.constant dense<0.000000e+00> : vector<8x128xf32>
    %2 = tpu.matmul %0, %1, %cst {dimension_numbers = #tpu.dot_dimension_numbers<[1], [0], [0], [1], [0, 0, 1, 1], [], []>} : vector<8x128xf32>, vector<128x128xf32>, vector<8x128xf32> -> vector<8x128xf32>
    %3 = arith.addf %0, %2 : vector<8x128xf32>
    %c0_3 = arith.constant 0 : index
    %c0_4 = arith.constant 0 : index
    %4 = vector.load %arg2[%c0_3, %c0_4] : memref<8x64xf32, #tpu.memory_space<vmem>>, vector<8x64xf32>
    %c0_5 = arith.constant 0 : index
    %c0_6 = arith.constant 0 : index
    %5 = vector.load %arg4[%c0_5, %c0_6] : memref<64x128xf32, #tpu.memory_space<vmem>>, vector<64x128xf32>
    %cst_7 = arith.constant dense<0.000000e+00> : vector<8x128xf32>
    %6 = tpu.matmul %4, %5, %cst_7 {dimension_numbers = #tpu.dot_dimension_numbers<[1], [0], [0], [1], [0, 0, 1, 1], [], []>} : vector<8x64xf32>, vector<64x128xf32>, vector<8x128xf32> -> vector<8x128xf32>
    %7 = arith.addf %3, %6 : vector<8x128xf32>
    %c0_8 = arith.constant 0 : index
    %c0_9 = arith.constant 0 : index
    %8 = vector.load %arg5[%c0_8, %c0_9] : memref<1x128xf32, #tpu.memory_space<vmem>>, vector<1x128xf32>
    %9 = vector.broadcast %8 : vector<1x128xf32> to vector<8x128xf32>
    %10 = arith.addf %7, %9 : vector<8x128xf32>
    %c0_10 = arith.constant 0 : index
    %c0_11 = arith.constant 0 : index
    %11 = vector.load %arg6[%c0_10, %c0_11] : memref<8x128xf32, #tpu.memory_space<vmem>>, vector<8x128xf32>
    tpu.vector_store %arg6[%c0_10, %c0_11], %10 {strides = array<i32>} : memref<8x128xf32, #tpu.memory_space<vmem>>, vector<8x128xf32>,
    return
  }
  func.func @transform_0(%arg0: i32) -> (i32, i32) {
    %c0_i32 = arith.constant 0 : i32
    %c0_i32_0 = arith.constant 0 : i32
    return %arg0, %c0_i32 : i32, i32
  }
  func.func @transform_1(%arg0: i32) -> (i32, i32) {
    %c0_i32 = arith.constant 0 : i32
    %c0_i32_0 = arith.constant 0 : i32
    return %arg0, %c0_i32 : i32, i32
  }
  func.func @transform_2(%arg0: i32) -> (i32, i32) {
    %c0_i32 = arith.constant 0 : i32
    %c0_i32_0 = arith.constant 0 : i32
    %c0_i32_1 = arith.constant 0 : i32
    return %c0_i32, %c0_i32_0 : i32, i32
  }
  func.func @transform_3(%arg0: i32) -> (i32, i32) {
    %c0_i32 = arith.constant 0 : i32
    %c0_i32_0 = arith.constant 0 : i32
    %c0_i32_1 = arith.constant 0 : i32
    return %c0_i32, %c0_i32_0 : i32, i32
  }
  func.func @transform_4(%arg0: i32) -> (i32, i32) {
    %c0_i32 = arith.constant 0 : i32
    %c0_i32_0 = arith.constant 0 : i32
    %c0_i32_1 = arith.constant 0 : i32
    return %c0_i32, %c0_i32_0 : i32, i32
  }
  func.func @transform_5(%arg0: i32) -> (i32, i32) {
    %c0_i32 = arith.constant 0 : i32
    %c0_i32_0 = arith.constant 0 : i32
    return %arg0, %c0_i32 : i32, i32
  }
}

</mosaic_0001>

<bundles_post_ra>
// kernel: dynamics_forward.1
= control target key start
LH: loop header
LB: loop body
LE: loop exit
PB: predicated region body
PF: predicated region fallthrough
CT: control target
= control target key end

     0   :  { %v289_v0 = vmov 0.0   ;;  %vm290_vm0 = vmmov 0   ;;  %vm117_vm1 = vcmask 523264   ;;  %s431_s2 = inlined_call_operand.vmem [shape: f32[128,128], index: 2, kind: input, shape index: {}]   ;;  %s432_s3 = inlined_call_operand.vmem [shape: f32[64,128], index: 3, kind: input, shape index: {}]   ;;  %s433_s1 = inlined_call_operand.vmem [shape: f32[8,64], index: 1, kind: input, shape index: {}]   ;;  %s434_s0 = inlined_call_operand.vmem [shape: f32[8,128], index: 0, kind: input, shape index: {}]   ;;  %s435_s4 = inlined_call_operand.vmem [shape: f32[1,128], index: 4, kind: input, shape index: {}]   ;;  %s436_s5 = inlined_call_operand.vmem [shape: f32[8,128], index: 5, kind: output, shape index: {}]  }
   0x1   :  { %233 = vmatprep.subr.mxu0 %v289_v0  ;;  %v36_v1 = vld [vmem:[%s431_s2 + $0x78] sm:$0xff]  ;;  %v35_v2 = vld [vmem:[%s431_s2 + $0x70] sm:$0xff]  ;;  %268 = vmatprep.subr.mxu1 %v289_v0  ;;  %v34_v3 = vld [vmem:[%s431_s2 + $0x68] sm:$0xff] }
   0x2   :  { %234 = vmatpush3.msra.mxu0 %v36_v1  ;;  %265 = vmatprep.mubr.msk.f32.mxu0 %vm290_vm0, %v289_v0  ;;  %v116_v4 = vld [vmem:[%s432_s3 + $0x38] sm:$0xff]  ;;  %v115_v5 = vld [vmem:[%s432_s3 + $0x30] sm:$0xff]  ;;  %v33_v6 = vld [vmem:[%s431_s2 + $0x60] sm:$0xff] }
   0x3   :  { %235 = vmatprep.subr.mxu0 %v289_v0  ;;  %284 = vmatprep.mubr.msk.f32.mxu1 %vm290_vm0, %v289_v0  ;;  %v114_v7 = vld [vmem:[%s432_s3 + $0x28] sm:$0xff]  ;;  %v32_v8 = vld [vmem:[%s431_s2 + $0x58] sm:$0xff]  ;;  %v113_v9 = vld [vmem:[%s432_s3 + $0x20] sm:$0xff] }
   0x4   :  { %236 = vmatpush3.msra.mxu0 %v35_v2  ;;  %269 = vmatpush3.msra.mxu1 %v116_v4  ;;  %v31_v10 = vld [vmem:[%s431_s2 + $0x50] sm:$0xff]  ;;  %v112_v11 = vld [vmem:[%s432_s3 + $0x18] sm:$0xff]  ;;  %v30_v12 = vld [vmem:[%s431_s2 + $0x48] sm:$0xff] }
   0x5   :  { %237 = vmatprep.subr.mxu0 %v289_v0  ;;  %270 = vmatprep.subr.mxu1 %v289_v0  ;;  %v111_v13 = vld [vmem:[%s432_s3 + $0x10] sm:$0xff]  ;;  %v29_v14 = vld [vmem:[%s431_s2 + $0x40] sm:$0xff]  ;;  %v110_v15 = vld [vmem:[%s432_s3 + $0x8] sm:$0xff] }
   0x6   :  { %238 = vmatpush3.msra.mxu0 %v34_v3  ;;  %271 = vmatpush3.msra.mxu1 %v115_v5  ;;  %v28_v16 = vld [vmem:[%s431_s2 + $0x38] sm:$0xff]  ;;  %v109_v17 = vld [vmem:[%s432_s3] sm:$0xff]  ;;  %v27_v18 = vld [vmem:[%s431_s2 + $0x30] sm:$0xff] }
   0x7   :  { %239 = vmatprep.subr.mxu0 %v289_v0  ;;  %272 = vmatprep.subr.mxu1 %v289_v0  ;;  %v108_v19 = vld [vmem:[%s433_s1] sm:$0xff]  ;;  %v26_v20 = vld [vmem:[%s431_s2 + $0x28] sm:$0xff]  ;;  %v24_v22 = vld [vmem:[%s431_s2 + $0x18] sm:$0xff] }
   0x8   :  { %240 = vmatpush3.msra.mxu0 %v33_v6  ;;  %273 = vmatpush3.msra.mxu1 %v114_v7  ;;  %v25_v21 = vld [vmem:[%s431_s2 + $0x20] sm:$0xff]  ;;  %v23_v23 = vld [vmem:[%s431_s2 + $0x10] sm:$0xff]  ;;  %v22_v24 = vld [vmem:[%s431_s2 + $0x8] sm:$0xff] }
   0x9   :  { %241 = vmatprep.subr.mxu0 %v289_v0  ;;  %274 = vmatprep.subr.mxu1 %v289_v0  ;;  %v21_v25 = vld [vmem:[%s431_s2] sm:$0xff] }
   0xa   :  { %242 = vmatpush3.msra.mxu0 %v32_v8  ;;  %275 = vmatpush3.msra.mxu1 %v113_v9  ;;  %v20_v26 = vld [vmem:[%s434_s0] sm:$0xff] }
   0xb   :  { %243 = vmatprep.subr.mxu0 %v289_v0  ;;  %276 = vmatprep.subr.mxu1 %v289_v0  ;;  %v206_v31 = vld [vmem:[%s435_s4] ss:$0 sm:$0xff] }
   0xc   :  { %244 = vmatpush3.msra.mxu0 %v31_v10  ;;  %277 = vmatpush3.msra.mxu1 %v112_v11 }
   0xd   :  { %245 = vmatprep.subr.mxu0 %v289_v0  ;;  %278 = vmatprep.subr.mxu1 %v289_v0 }
   0xe   :  { %246 = vmatpush3.msra.mxu0 %v30_v12  ;;  %279 = vmatpush3.msra.mxu1 %v111_v13 }
   0xf   :  { %247 = vmatprep.subr.mxu0 %v289_v0  ;;  %280 = vmatprep.subr.mxu1 %v289_v0 }
  0x10   :  { %248 = vmatpush3.msra.mxu0 %v29_v14  ;;  %281 = vmatpush3.msra.mxu1 %v110_v15 }
  0x11   :  { %249 = vmatprep.subr.mxu0 %v289_v0  ;;  %282 = vmatprep.subr.mxu1 %v289_v0 }
  0x12   :  { %250 = vmatpush3.msra.mxu0 %v28_v16  ;;  %283 = vmatpush3.msra.mxu1 %v109_v17 }
  0x13   :  { %251 = vmatprep.subr.mxu0 %v289_v0  ;;  %285 = vmatmul.mubr.msk.f32.vlgmr.msra.gmra.mxu1 %vm117_vm1, %v108_v19 }
  0x14   :  { %252 = vmatpush3.msra.mxu0 %v27_v18 }
  0x15   :  { %253 = vmatprep.subr.mxu0 %v289_v0 }
  0x16   :  { %254 = vmatpush3.msra.mxu0 %v26_v20 }
  0x17   :  { %255 = vmatprep.subr.mxu0 %v289_v0 }
  0x18   :  { %256 = vmatpush3.msra.mxu0 %v25_v21 }
  0x19   :  { %257 = vmatprep.subr.mxu0 %v289_v0 }
  0x1a   :  { %258 = vmatpush3.msra.mxu0 %v24_v22 }
  0x1b   :  { %259 = vmatprep.subr.mxu0 %v289_v0 }
  0x1c   :  { %260 = vmatpush3.msra.mxu0 %v23_v23 }
  0x1d   :  { %261 = vmatprep.subr.mxu0 %v289_v0 }
  0x1e   :  { %262 = vmatpush3.msra.mxu0 %v22_v24 }
  0x1f   :  { %263 = vmatprep.subr.mxu0 %v289_v0 }
  0x20   :  { %264 = vmatpush3.msra.mxu0 %v21_v25 }
  0x21   :  { %266 = vmatmul.mubr.f32.vlgmr.msra.gmra.mxu0 %v20_v26 }
  0xd3   :  { %v187_v27 = vpop.f32.mrf.mxu1 }
  0xd5   :  { %v286_v28 = vpop.f32.mrf.mxu1 }
  0xe1   :  { %v103_v29 = vpop.f32.mrf.mxu0 }
  0xe2   :  { %v107_v30 = vadd.f32 %v103_v29, %v20_v26 }
  0xe3   :  { %v267_v32 = vpop.f32.mrf.mxu0 }
  0xe4   :  { %v191_v33 = vadd.f32 %v187_v27, %v107_v30 }
  0xe6   :  { %v199_v34 = vadd.f32 %v206_v31, %v191_v33 }
  0xe8   :  { %200 = vst [vmem:[%s436_s5] sm:$0xff] %v199_v34 }

</bundles_post_ra>
